<compile_context>
chip_gen: v5e
topology: v5e:2x2
jax: 0.10.0
libtpu: 0.0.40
codegen_flags: <defaults>
</compile_context>

<pallas_src>
import functools

import jax
import jax.numpy as jnp
import numpy as np
from jax.experimental import pallas as pl
from jax.experimental.pallas import tpu as pltpu


def _e2e_kernel(x_ref, w_ref, e1_ref, e2_ref, o_ref, *, planes):
    """One grid step = one block of Nb samples, all P output planes.

    Shapes seen by the kernel (Nb = samples per step, CD = C*d, dd = d*d):
      x_ref  : (Nb*d, 2*CD)   rows (m, r); cols [ (c,w) | (c,h) ]
               x_ref[m*d+r, c*d+w]      = x[n0+m, c, r, w]
               x_ref[m*d+r, CD + c*d+h] = x[n0+m, c, h, r]
      w_ref  : (2*P, 2*CD)    block-diagonal [[W1m, 0], [0, W2m]]
      e1_ref : (Nb*d, Nb*dd)  e1[(m,r),(m',i,j)] = (m==m') & (r==i)
      e2_ref : (Nb*d, Nb*dd)  e2[(m,r),(m',i,j)] = (m==m') & (r==j)
      o_ref  : (P, Nb*dd)     out[p, m*dd + i*d + j]
    """
    # Fused row-conv + col-conv contraction: ONE MXU matmul, K = 2*C*d.
    #   ab[p,     (m,r)] = sum_{c,w} W1[p,c,0,w] * x[n0+m, c, r, w]  (= a, r==i)
    #   ab[P + p, (m,r)] = sum_{c,h} W2[p,c,h,0] * x[n0+m, c, h, r]  (= b, r==j)
    ab = jnp.einsum('qk,rk->qr', w_ref[...], x_ref[...],
                    preferred_element_type=jnp.float32)            # (2P, Nb*d)
    a = ab[:planes]                                                # (P, Nb*d), lanes (m, i)
    b = ab[planes:]                                                # (P, Nb*d), lanes (m, j)
    # d-fold expansion (the PyTorch cat/tile) done on-chip by the MXU with
    # 0/1 matrices: out[p,(m,i,j)] = a[p,(m,i)] + b[p,(m,j)].
    out = jnp.dot(a, e1_ref[...], preferred_element_type=jnp.float32)
    out = out + jnp.dot(b, e2_ref[...], preferred_element_type=jnp.float32)
    o_ref[...] = out.astype(o_ref.dtype)


def e2e_block(x, w1, w2, *, samples_per_step=None):
    """x: (N, C, d, d); w1: (P, C, 1, d); w2: (P, C, d, 1). Returns (N, P, d, d)."""
    N, C, H, W = x.shape
    P, Cw, kh1, d = w1.shape
    assert Cw == C and kh1 == 1 and w2.shape == (P, C, d, 1)
    assert H == d and W == d, "E2EBlock cat+add only broadcasts for square d x d inputs"
    assert d % 8 == 0, "kernel assumes d is a sublane multiple (pad spatial axis otherwise)"
    dd = d * d
    CD = C * d

    # --- samples per grid step: amortize per-step overhead, keep the
    #     expansion matrices small, keep grid >= 2 when N allows (megacore) --
    if samples_per_step is None:
        nb = max(1, min(N, 128 // d)) if d <= 128 else 1
    else:
        nb = max(1, min(N, samples_per_step))
    if (nb * dd) % 128 != 0:       # output lane-tiling constraint
        nb = N                     # fall back to one full block (grid = 1)
    n_pad = ((N + nb - 1) // nb) * nb
    grid = (n_pad // nb,)
    if n_pad != N:
        x = jnp.pad(x, ((0, n_pad - N), (0, 0), (0, 0), (0, 0)))

    # --- wrapper-side layout plumbing: raw x only (no d-fold expansion) -----
    # Two views of raw x, rows = (sample, spatial), lanes = contraction.
    xa = jnp.transpose(x, (0, 2, 1, 3)).reshape(n_pad * d, CD)   # [(n,i), (c,w)]
    xb = jnp.transpose(x, (0, 3, 1, 2)).reshape(n_pad * d, CD)   # [(n,j), (c,h)]
    xcat = jnp.concatenate([xa, xb], axis=1)                     # (n_pad*d, 2*CD)
    # NOTE: xcat = xcat.astype(jnp.bfloat16) (and wblk likewise) halves the
    # streamed HBM bytes if the accuracy budget allows (accumulation stays f32).

    # Block-diagonal fused weights: rows 0..P-1 apply W1 to the (c,w) half,
    # rows P..2P-1 apply W2 to the (c,h) half -> one K = 2*C*d matmul in-kernel.
    w1m = w1.reshape(P, CD).astype(x.dtype)
    w2m = w2.reshape(P, CD).astype(x.dtype)
    z = jnp.zeros((P, CD), x.dtype)
    wblk = jnp.concatenate(
        [jnp.concatenate([w1m, z], axis=1),
         jnp.concatenate([z, w2m], axis=1)], axis=0)              # (2P, 2*CD)

    # 0/1 expansion matrices, block-diagonal over the nb samples of one step:
    #   e1[(m,r),(m,i,j)] = (r == i)  (repeat each row value d times along j)
    #   e2[(m,r),(m,i,j)] = (r == j)  (tile the column values d times along i)
    eye_d = jnp.eye(d, dtype=x.dtype)
    e1 = jnp.kron(jnp.eye(nb, dtype=x.dtype),
                  jnp.kron(eye_d, jnp.ones((1, d), x.dtype)))     # (nb*d, nb*dd)
    e2 = jnp.kron(jnp.eye(nb, dtype=x.dtype),
                  jnp.tile(eye_d, (1, d)))                        # (nb*d, nb*dd)

    out_flat = pl.pallas_call(
        functools.partial(_e2e_kernel, planes=P),
        out_shape=jax.ShapeDtypeStruct((P, n_pad * dd), x.dtype),
        grid_spec=pltpu.PrefetchScalarGridSpec(
            num_scalar_prefetch=0,
            grid=grid,                       # one step per block of nb samples
            in_specs=[
                # raw-x block for this step's samples (rows vary with n)
                pl.BlockSpec((nb * d, 2 * CD), lambda n: (n, 0)),
                # constant blocks: fetched once, resident across all steps
                pl.BlockSpec((2 * P, 2 * CD), lambda n: (0, 0)),
                pl.BlockSpec((nb * d, nb * dd), lambda n: (0, 0)),
                pl.BlockSpec((nb * d, nb * dd), lambda n: (0, 0)),
            ],
            # lane-dense output: nb*dd lanes per store (multiple of 128)
            out_specs=pl.BlockSpec((P, nb * dd), lambda n: (0, n)),
        ),
        compiler_params=pltpu.CompilerParams(
            dimension_semantics=("parallel",)),   # megacore-shardable over sample blocks
    )(xcat, wblk, e1, e2)

    # (P, n_pad*dd) -> (N, P, d, d): one cheap XLA transpose of the output.
    out = out_flat.reshape(P, n_pad, d, d)
    return jnp.transpose(out, (1, 0, 2, 3))[:N]


def reference(x, w1, w2):
    """Pure-JAX reference mirroring the PyTorch forward exactly."""
    dn = ("NCHW", "OIHW", "NCHW")
    a = jax.lax.conv_general_dilated(x, w1, window_strides=(1, 1), padding="VALID",
                                     dimension_numbers=dn,
                                     precision=jax.lax.Precision.HIGHEST)   # (N,P,d,1)
    b = jax.lax.conv_general_dilated(x, w2, window_strides=(1, 1), padding="VALID",
                                     dimension_numbers=dn,
                                     precision=jax.lax.Precision.HIGHEST)   # (N,P,1,d)
    d = w1.shape[-1]
    return jnp.concatenate([a] * d, axis=3) + jnp.concatenate([b] * d, axis=2)


if __name__ == "__main__":
    # Small shapes consistent with the module: in_planes=4, planes=4, size d=16.
    N, in_planes, planes, d = 2, 4, 4, 16

    key = jax.random.PRNGKey(0)
    kx, k1, k2 = jax.random.split(key, 3)
    x = jax.random.normal(kx, (N, in_planes, d, d), dtype=jnp.float32)
    # PyTorch Conv2d default init bound: 1/sqrt(fan_in) = 1/sqrt(C * kH * kW).
    bound = 1.0 / np.sqrt(in_planes * d)
    w1 = jax.random.uniform(k1, (planes, in_planes, 1, d), jnp.float32, -bound, bound)
    w2 = jax.random.uniform(k2, (planes, in_planes, d, 1), jnp.float32, -bound, bound)

    fwd = jax.jit(e2e_block)
    out = jax.block_until_ready(fwd(x, w1, w2))
    ref = jax.block_until_ready(reference(x, w1, w2))

    assert out.shape == (N, planes, d, d), out.shape
    np.testing.assert_allclose(np.asarray(out), np.asarray(ref), rtol=1e-5, atol=1e-5)
    print("KERNEL_OK")
</pallas_src>

<mosaic_0001>
module attributes {stable_mosaic.version = 11 : i64} {
  func.func @_e2e_kernel(%arg0: i32, %arg1: memref<32x128xf32, #tpu.memory_space<vmem>>, %arg2: memref<8x128xf32, #tpu.memory_space<vmem>>, %arg3: memref<32x512xf32, #tpu.memory_space<vmem>>, %arg4: memref<32x512xf32, #tpu.memory_space<vmem>>, %arg5: memref<4x512xf32, #tpu.memory_space<vmem>>) attributes {dimension_semantics = [#tpu.dimension_semantics<parallel>], iteration_bounds = array<i64: 1>, scalar_prefetch = 0 : i64, scratch_operands = 0 : i64, tpu.core_type = #tpu.core_type<tc>, window_params = [{transform_indices = @transform_0, window_bounds = array<i64: 32, 128>}, {pipeline_mode = #tpu.pipeline_mode<synchronous>, transform_indices = @transform_1, window_bounds = array<i64: 8, 128>}, {pipeline_mode = #tpu.pipeline_mode<synchronous>, transform_indices = @transform_2, window_bounds = array<i64: 32, 512>}, {pipeline_mode = #tpu.pipeline_mode<synchronous>, transform_indices = @transform_3, window_bounds = array<i64: 32, 512>}, {transform_indices = @transform_4, window_bounds = array<i64: 4, 512>}]} {
    %c0 = arith.constant 0 : index
    %c0_0 = arith.constant 0 : index
    %0 = vector.load %arg2[%c0, %c0_0] : memref<8x128xf32, #tpu.memory_space<vmem>>, vector<8x128xf32>
    %c0_1 = arith.constant 0 : index
    %c0_2 = arith.constant 0 : index
    %1 = vector.load %arg1[%c0_1, %c0_2] : memref<32x128xf32, #tpu.memory_space<vmem>>, vector<32x128xf32>
    "tpu.trace_start"() <{level = 10 : i32, message = "qk,rk->qr"}> : () -> ()
    %cst = arith.constant dense<0.000000e+00> : vector<8x32xf32>
    %2 = tpu.matmul %0, %1, %cst {dimension_numbers = #tpu.dot_dimension_numbers<[1], [1], [0], [0], [0, 0, 1, 0], [], []>} : vector<8x128xf32>, vector<32x128xf32>, vector<8x32xf32> -> vector<8x32xf32>
    "tpu.trace_stop"() : () -> ()
    %3 = vector.extract_strided_slice %2 {offsets = [0, 0], sizes = [4, 32], strides = [1, 1]} : vector<8x32xf32> to vector<4x32xf32>
    %4 = vector.extract_strided_slice %2 {offsets = [4, 0], sizes = [4, 32], strides = [1, 1]} : vector<8x32xf32> to vector<4x32xf32>
    %c0_3 = arith.constant 0 : index
    %c0_4 = arith.constant 0 : index
    %5 = vector.load %arg3[%c0_3, %c0_4] : memref<32x512xf32, #tpu.memory_space<vmem>>, vector<32x512xf32>
    %cst_5 = arith.constant dense<0.000000e+00> : vector<4x512xf32>
    %6 = tpu.matmul %3, %5, %cst_5 {dimension_numbers = #tpu.dot_dimension_numbers<[1], [0], [0], [1], [0, 0, 1, 1], [], []>} : vector<4x32xf32>, vector<32x512xf32>, vector<4x512xf32> -> vector<4x512xf32>
    %c0_6 = arith.constant 0 : index
    %c0_7 = arith.constant 0 : index
    %7 = vector.load %arg4[%c0_6, %c0_7] : memref<32x512xf32, #tpu.memory_space<vmem>>, vector<32x512xf32>
    %cst_8 = arith.constant dense<0.000000e+00> : vector<4x512xf32>
    %8 = tpu.matmul %4, %7, %cst_8 {dimension_numbers = #tpu.dot_dimension_numbers<[1], [0], [0], [1], [0, 0, 1, 1], [], []>} : vector<4x32xf32>, vector<32x512xf32>, vector<4x512xf32> -> vector<4x512xf32>
    %9 = arith.addf %6, %8 : vector<4x512xf32>
    %c0_9 = arith.constant 0 : index
    %c0_10 = arith.constant 0 : index
    %10 = vector.load %arg5[%c0_9, %c0_10] : memref<4x512xf32, #tpu.memory_space<vmem>>, vector<4x512xf32>
    tpu.vector_store %arg5[%c0_9, %c0_10], %9 {strides = array<i32>} : memref<4x512xf32, #tpu.memory_space<vmem>>, vector<4x512xf32>,
    return
  }
  func.func @transform_0(%arg0: i32) -> (i32, i32) {
    %c0_i32 = arith.constant 0 : i32
    %c0_i32_0 = arith.constant 0 : i32
    return %arg0, %c0_i32 : i32, i32
  }
  func.func @transform_1(%arg0: i32) -> (i32, i32) {
    %c0_i32 = arith.constant 0 : i32
    %c0_i32_0 = arith.constant 0 : i32
    %c0_i32_1 = arith.constant 0 : i32
    return %c0_i32, %c0_i32_0 : i32, i32
  }
  func.func @transform_2(%arg0: i32) -> (i32, i32) {
    %c0_i32 = arith.constant 0 : i32
    %c0_i32_0 = arith.constant 0 : i32
    %c0_i32_1 = arith.constant 0 : i32
    return %c0_i32, %c0_i32_0 : i32, i32
  }
  func.func @transform_3(%arg0: i32) -> (i32, i32) {
    %c0_i32 = arith.constant 0 : i32
    %c0_i32_0 = arith.constant 0 : i32
    %c0_i32_1 = arith.constant 0 : i32
    return %c0_i32, %c0_i32_0 : i32, i32
  }
  func.func @transform_4(%arg0: i32) -> (i32, i32) {
    %c0_i32 = arith.constant 0 : i32
    %c0_i32_0 = arith.constant 0 : i32
    return %c0_i32, %arg0 : i32, i32
  }
}

</mosaic_0001>

<bundles_post_ra>
// kernel: e2e_block.1
= control target key start
LH: loop header
LB: loop body
LE: loop exit
PB: predicated region body
PF: predicated region fallthrough
CT: control target
= control target key end

     0   :  { %vm76_vm0 = vcmask 261120   ;;  %vm247_vm1 = vcmask 1043456   ;;  %s416_s0 = inlined_call_operand.vmem [shape: f32[32,128], index: 0, kind: input, shape index: {}]   ;;  %s417_s3 = inlined_call_operand.vmem [shape: f32[32,512], index: 3, kind: input, shape index: {}]   ;;  %s418_s2 = inlined_call_operand.vmem [shape: f32[32,512], index: 2, kind: input, shape index: {}]   ;;  %s419_s1 = inlined_call_operand.vmem [shape: f32[8,128], index: 1, kind: input, shape index: {}]   ;;  %s420_s4 = inlined_call_operand.vmem [shape: f32[4,512], index: 4, kind: output, shape index: {}]  }
   0x1   :  { %v21_v0 = vld [vmem:[%s416_s0 + $0x18] sm:$0xff]  ;;  %v20_v1 = vld [vmem:[%s416_s0 + $0x10] sm:$0xff]  ;;  %v70_v2 = vld [vmem:[%s417_s3 + $0x60] sm:$0xff] }
   0x2   :  { %34 = vmatpush.xpose.msra.mxu0 %v21_v0  ;;  %v71_v3 = vld [vmem:[%s417_s3 + $0x68] sm:$0xff]  ;;  %v72_v4 = vld [vmem:[%s417_s3 + $0x70] sm:$0xff]  ;;  %91 = vmatpush.msra.mxu1 %v70_v2  ;;  %v66_v5 = vld [vmem:[%s417_s3 + $0x40] sm:$0xff] }
   0x3   :  { %111 = vmatpush.msra.mxu2 %v71_v3  ;;  %v67_v6 = vld [vmem:[%s417_s3 + $0x48] sm:$0xff]  ;;  %131 = vmatpush.msra.mxu3 %v72_v4  ;;  %v68_v7 = vld [vmem:[%s417_s3 + $0x50] sm:$0xff]  ;;  %v18_v9 = vld [vmem:[%s416_s0] sm:$0xff] }
   0x4   :  { %92 = vmatpush.msra.mxu1 %v66_v5  ;;  %v19_v8 = vld [vmem:[%s416_s0 + $0x8] sm:$0xff]  ;;  %v56_v10 = vld [vmem:[%s418_s2 + $0x70] sm:$0xff]  ;;  %v17_v11 = vld [vmem:[%s419_s1] sm:$0xff] }
   0x5   :  { %112 = vmatpush.msra.mxu2 %v67_v6  ;;  %132 = vmatpush.msra.mxu3 %v68_v7  ;;  %v52_v12 = vld [vmem:[%s418_s2 + $0x50] sm:$0xff]  ;;  %v62_v14 = vld [vmem:[%s417_s3 + $0x20] sm:$0xff]  ;;  %v63_v15 = vld [vmem:[%s417_s3 + $0x28] sm:$0xff] }
   0x6   :  { %35 = vmatpush.xpose.msra.mxu0 %v20_v1  ;;  %v48_v13 = vld [vmem:[%s418_s2 + $0x30] sm:$0xff]  ;;  %93 = vmatpush.msra.mxu1 %v62_v14  ;;  %v58_v18 = vld [vmem:[%s417_s3] sm:$0xff]  ;;  %v59_v19 = vld [vmem:[%s417_s3 + $0x8] sm:$0xff] }
   0x7   :  { %v64_v16 = vld [vmem:[%s417_s3 + $0x30] sm:$0xff]  ;;  %113 = vmatpush.msra.mxu2 %v63_v15  ;;  %v73_v21 = vld [vmem:[%s417_s3 + $0x78] sm:$0xff]  ;;  %v54_v22 = vld [vmem:[%s418_s2 + $0x60] sm:$0xff] }
   0x8   :  { %v44_v17 = vld [vmem:[%s418_s2 + $0x10] sm:$0xff]  ;;  %133 = vmatpush.msra.mxu3 %v64_v16  ;;  %94 = vmatpush.msra.mxu1 %v58_v18  ;;  %v55_v23 = vld [vmem:[%s418_s2 + $0x68] sm:$0xff]  ;;  %v69_v24 = vld [vmem:[%s417_s3 + $0x58] sm:$0xff] }
   0x9   :  { %v60_v20 = vld [vmem:[%s417_s3 + $0x10] sm:$0xff]  ;;  %114 = vmatpush.msra.mxu2 %v59_v19  ;;  %v50_v25 = vld [vmem:[%s418_s2 + $0x40] sm:$0xff]  ;;  %v51_v26 = vld [vmem:[%s418_s2 + $0x48] sm:$0xff] }
   0xa   :  { %36 = vmatpush.xpose.msra.mxu0 %v19_v8  ;;  %134 = vmatpush.msra.mxu3 %v60_v20  ;;  %v65_v27 = vld [vmem:[%s417_s3 + $0x38] sm:$0xff]  ;;  %v46_v28 = vld [vmem:[%s418_s2 + $0x20] sm:$0xff]  ;;  %v47_v29 = vld [vmem:[%s418_s2 + $0x28] sm:$0xff] }
   0xb   :  { %151 = vmatpush.msrb.mxu1 %v73_v21  ;;  %173 = vmatpush.msrb.mxu2 %v54_v22  ;;  %v61_v30 = vld [vmem:[%s417_s3 + $0x18] sm:$0xff]  ;;  %v42_v31 = vld [vmem:[%s418_s2] sm:$0xff]  ;;  %v43_v32 = vld [vmem:[%s418_s2 + $0x8] sm:$0xff] }
   0xc   :  { %193 = vmatpush.msrb.mxu3 %v55_v23  ;;  %v57_v35 = vld [vmem:[%s418_s2 + $0x78] sm:$0xff] }
   0xd   :  { %152 = vmatpush.msrb.mxu1 %v69_v24  ;;  %174 = vmatpush.msrb.mxu2 %v50_v25  ;;  %v53_v36 = vld [vmem:[%s418_s2 + $0x58] sm:$0xff] }
   0xe   :  { %37 = vmatpush.xpose.msra.mxu0 %v18_v9  ;;  %194 = vmatpush.msrb.mxu3 %v51_v26  ;;  %v49_v37 = vld [vmem:[%s418_s2 + $0x38] sm:$0xff] }
   0xf   :  { %153 = vmatpush.msrb.mxu1 %v65_v27  ;;  %175 = vmatpush.msrb.mxu2 %v46_v28  ;;  %v45_v38 = vld [vmem:[%s418_s2 + $0x18] sm:$0xff] }
  0x10   :  { %195 = vmatpush.msrb.mxu3 %v47_v29 }
  0x11   :  { %38 = vmatmul.f32.vlgmr.msra.gmra.mxu0 %v17_v11  ;;  %154 = vmatpush.msrb.mxu1 %v61_v30 }
  0x12   :  { %213 = vmatpush.msrb.mxu0 %v56_v10  ;;  %176 = vmatpush.msrb.mxu2 %v42_v31 }
  0x13   :  { %196 = vmatpush.msrb.mxu3 %v43_v32 }
  0x14   :  { %214 = vmatpush.msrb.mxu0 %v52_v12 }
  0x16   :  { %215 = vmatpush.msrb.mxu0 %v48_v13 }
  0x18   :  { %216 = vmatpush.msrb.mxu0 %v44_v17 }
  0x8e   :  { %v39_v33 = vpop.f32.mrf.mxu0 }
  0x8f   :  { %264 = vmatmul.msk.f32.vlgmr.msrb.gmra.mxu0 %vm76_vm0, %v39_v33  ;;  %v75_v34 = vrot.slane %v39_v33, 4 }
  0x91   :  { %258 = vmatmul.msk.f32.vlgmr.msra.gmra.mxu1 %vm76_vm0, %v75_v34  ;;  %259 = vmatmul.msk.f32.vlgmr.msra.gmra.mxu2 %vm76_vm0, %v75_v34 }
  0x92   :  { %260 = vmatmul.msk.f32.vlgmr.msra.gmra.mxu3 %vm76_vm0, %v75_v34  ;;  %233 = vmatpush.msra.mxu1 %v57_v35 }
  0x94   :  { %234 = vmatpush.msra.mxu1 %v53_v36 }
  0x96   :  { %235 = vmatpush.msra.mxu1 %v49_v37 }
  0x98   :  { %236 = vmatpush.msra.mxu1 %v45_v38 }
  0x99   :  { %261 = vmatmul.msk.f32.vlgmr.msrb.gmra.mxu1 %vm76_vm0, %v75_v34  ;;  %262 = vmatmul.msk.f32.vlgmr.msrb.gmra.mxu2 %vm76_vm0, %v39_v33 }
  0x9a   :  { %263 = vmatmul.msk.f32.vlgmr.msrb.gmra.mxu3 %vm76_vm0, %v39_v33 }
  0xa1   :  { %265 = vmatmul.msk.f32.vlgmr.msra.gmra.mxu1 %vm76_vm0, %v39_v33 }
 0x10c   :  { %v218_v48 = vpop.f32.mrf.mxu0 }
 0x10e   :  { %v96_v39 = vpop.f32.mrf.mxu1 }
 0x114   :  { %v116_v40 = vpop.f32.mrf.mxu2 }
 0x115   :  { %v136_v41 = vpop.f32.mrf.mxu3 }
 0x116   :  { %v156_v42 = vpop.f32.mrf.mxu1  ;;  %v219_v51 = vadd.f32 %v218_v48, %v136_v41 }
 0x11c   :  { %v178_v43 = vpop.f32.mrf.mxu2 }
 0x11d   :  { %v198_v44 = vpop.f32.mrf.mxu3  ;;  %v179_v49 = vadd.f32 %v178_v43, %v96_v39 }
 0x11e   :  { %v199_v45 = vadd.f32 %v198_v44, %v116_v40  ;;  %v238_v46 = vpop.f32.mrf.mxu1 }
 0x11f   :  { %v239_v47 = vadd.f32 %v238_v46, %v156_v42 }
 0x120   :  { %v245_v50 = vrot.slane %v199_v45, 4 }
 0x121   :  { %v246_v52 = vrot.slane %v239_v47, 4 }
 0x122   :  { %v248_v53 = vsel %vm247_vm1, %v179_v49, %v245_v50 }
 0x123   :  { %252 = vst [vmem:[%s420_s4] sm:$0xff] %v248_v53  ;;  %v249_v54 = vsel %vm247_vm1, %v219_v51, %v246_v52 }
 0x124   :  { %253 = vst [vmem:[%s420_s4 + $0x8] sm:$0xff] %v249_v54 }

</bundles_post_ra>
